<compile_context>
chip_gen: v5e
topology: v5e:2x2
jax: 0.10.0
libtpu: 0.0.40
codegen_flags: <defaults>
</compile_context>

<pallas_src>
import functools

import jax
import jax.numpy as jnp
from jax.experimental import pallas as pl
from jax.experimental.pallas import tpu as pltpu


# ----------------------------- kernel --------------------------------------- #
def _neg_scale_kernel(neg_lam, g_ref, o_ref):
    # backward: dx = (-lambda) * grads   (neg_lam is a baked-in Python float,
    # weak-typed so bf16/fp16 gradients are not upcast in memory).
    o_ref[...] = g_ref[...] * neg_lam


# --------------------------- tiling helpers ---------------------------------- #
def _sublane_multiple(dtype):
    # (8,128) tiling is per 32-bit word: 8 sublanes for 4B, 16 for 2B, 32 for 1B.
    itemsize = jnp.dtype(dtype).itemsize
    return max(8, 32 // itemsize)


def _choose_lanes(n):
    """Widest lane extent (multiple of 128) that divides n exactly (no padding)."""
    for lanes in (4096, 2048, 1024, 512, 256, 128):
        if n % lanes == 0:
            return lanes
    return None


def _block_target_bytes():
    """Per-block buffer budget; 4x this (in + out, double-buffered) must stay
    under each generation's scoped-VMEM default."""
    try:
        kind = jax.devices()[0].device_kind.lower()
    except Exception:  # defensive: fall back to the safest budget
        kind = ""
    if ("v6" in kind) or ("v7" in kind) or ("7x" in kind):
        # v6e/v7x: 32 MiB scoped default (v7x: 64 MiB physical VMEM)
        # -> 4 MiB blocks, ~16 MiB total with double buffering.
        return 4 << 20
    # v5e (16 MiB scoped default) and unknown chips: 2 MiB blocks, ~8 MiB total.
    return 2 << 20


def _round_up(x, m):
    return ((x + m - 1) // m) * m


def _pick_tile_rows(rows, cols, itemsize, sub):
    """Row-tile size: ~block-target bytes, a multiple of `sub`, with >= 2 grid
    steps whenever the tensor spans more than one sublane tile, preferring an
    exact divisor of `rows` so every step is a full, unmasked block."""
    per_row = max(cols * itemsize, 1)
    target = max(sub, (_block_target_bytes() // per_row) // sub * sub)
    if rows > sub:
        # v7x has two TensorCores; the "parallel" grid axis shards across them,
        # so guarantee at least 2 grid steps for anything non-tiny.
        target = min(target, _round_up(pl.cdiv(rows, 2), sub))
    if rows <= target:
        return rows
    tr = max(sub, (target // sub) * sub)
    # Prefer an exact divisor of rows within ~2x of the target (down in `sub`
    # steps) so there is no masked remainder block.
    cand = tr
    lo = max(sub, tr // 2)
    while cand >= lo:
        if rows % cand == 0:
            return cand
        cand -= sub
    return tr


# --------------------------- pallas wrapper ----------------------------------- #
def _neg_scale_pallas(g2, neg_lam):
    rows, cols = g2.shape
    dtype = g2.dtype
    itemsize = jnp.dtype(dtype).itemsize
    sub = _sublane_multiple(dtype)

    # Row-only tiling: block = (tr, cols). Legal because tr is a multiple of
    # the sublane count (or == rows) and cols is either a 128-multiple
    # (lane-dense reshape) or the full last dim.
    tr = _pick_tile_rows(rows, cols, itemsize, sub)
    grid = (pl.cdiv(rows, tr),)

    kernel = functools.partial(_neg_scale_kernel, neg_lam)
    n = rows * cols
    return pl.pallas_call(
        kernel,
        out_shape=jax.ShapeDtypeStruct((rows, cols), dtype),
        grid=grid,
        in_specs=[pl.BlockSpec((tr, cols), lambda i: (i, 0))],
        out_specs=pl.BlockSpec((tr, cols), lambda i: (i, 0)),
        compiler_params=pltpu.CompilerParams(
            dimension_semantics=("parallel",)),
        cost_estimate=pl.CostEstimate(
            flops=n, transcendentals=0, bytes_accessed=2 * n * itemsize),
    )(g2)


def _neg_scale(g, lambda_):
    neg_lam = -float(lambda_)
    n = g.size
    if n == 0:
        return g
    lanes = _choose_lanes(n)
    if lanes is not None:
        g2 = g.reshape(n // lanes, lanes)          # free reshape, lane-dense
    elif g.ndim >= 2:
        # TODO(synk): if a (non-128-divisible) last dim alone exceeded the VMEM
        # block budget, column tiling would also be needed; such gradient
        # shapes do not occur for this module.
        g2 = g.reshape(-1, g.shape[-1])            # free reshape, row-tiled
    else:
        g2 = g.reshape(1, n)
    out2 = _neg_scale_pallas(g2, neg_lam)
    return out2.reshape(g.shape)


# ------------------------ GradientReversal module --------------------------- #
@functools.partial(jax.custom_vjp, nondiff_argnums=(1,))
def gradient_reversal(x, lambda_=1.0):
    """Forward: identity (x.clone() semantics need no copy in JAX).
    Backward: dx = -lambda_ * grads (Pallas kernel).
    Note: lambda_ must be a static Python number (nondiff_argnums)."""
    return x


def _grl_fwd(x, lambda_):
    return x, None


def _grl_bwd(lambda_, _res, g):
    return (_neg_scale(g, lambda_),)


gradient_reversal.defvjp(_grl_fwd, _grl_bwd)


class GradientReversal:
    """JAX/Pallas equivalent of the PyTorch GradientReversal module."""

    def __init__(self, lambda_=1):
        self.lambda_ = float(lambda_)

    def __call__(self, x):
        return gradient_reversal(x, self.lambda_)


# --------------------------------- main ------------------------------------- #
if __name__ == "__main__":
    key = jax.random.PRNGKey(0)
    x = jax.random.normal(key, (2, 4, 16, 16), dtype=jnp.float32)  # NCHW

    grl = GradientReversal(lambda_=1.0)

    # forward (identity)
    y = jax.block_until_ready(grl(x))
    assert y.shape == x.shape and y.dtype == x.dtype
    assert bool(jnp.allclose(y, x)), "forward must be identity"

    # backward (gradient reversal): d/dx sum(GRL(x)) == -lambda * ones
    grads = jax.block_until_ready(jax.grad(lambda v: jnp.sum(grl(v)))(x))
    assert bool(jnp.allclose(grads, -jnp.ones_like(x))), "backward must be -lambda*g"

    # backward with non-unit lambda, under jit
    grl2 = GradientReversal(lambda_=2.5)
    grads2 = jax.block_until_ready(
        jax.jit(jax.grad(lambda v: jnp.sum(grl2(v))))(x))
    assert bool(jnp.allclose(grads2, -2.5 * jnp.ones_like(x))), \
        "backward must scale by -lambda"

    # odd shape (element count not divisible by 128) exercises the row-tiled
    # non-lane-dense fallback path
    x_odd = jax.random.normal(key, (2, 3, 17, 19), dtype=jnp.float32)
    grl3 = GradientReversal(lambda_=1.5)
    grads3 = jax.block_until_ready(
        jax.jit(jax.grad(lambda v: jnp.sum(grl3(v))))(x_odd))
    assert bool(jnp.allclose(grads3, -1.5 * jnp.ones_like(x_odd))), \
        "backward must be -lambda*g for non-128-divisible shapes"

    # bf16 gradients keep their dtype (weak-typed python-float scale)
    x_bf = x.astype(jnp.bfloat16)
    grl4 = GradientReversal(lambda_=0.5)
    grads4 = jax.block_until_ready(
        jax.grad(lambda v: jnp.sum(grl4(v).astype(jnp.float32)))(x_bf))
    assert grads4.dtype == jnp.bfloat16
    assert bool(jnp.allclose(grads4.astype(jnp.float32), -0.5)), \
        "bf16 backward must be -lambda*g"

    print("KERNEL_OK")
</pallas_src>

<mosaic_0001>
module attributes {stable_mosaic.version = 11 : i64} {
  func.func @_neg_scale_kernel(%arg0: i32, %arg1: memref<1x2048xf32, #tpu.memory_space<vmem>>, %arg2: memref<1x2048xf32, #tpu.memory_space<vmem>>) attributes {dimension_semantics = [#tpu.dimension_semantics<parallel>], iteration_bounds = array<i64: 1>, scalar_prefetch = 0 : i64, scratch_operands = 0 : i64, tpu.core_type = #tpu.core_type<tc>, window_params = [{transform_indices = @transform_0, window_bounds = array<i64: 1, 2048>}, {transform_indices = @transform_1, window_bounds = array<i64: 1, 2048>}]} {
    %c0 = arith.constant 0 : index
    %c0_0 = arith.constant 0 : index
    %0 = vector.load %arg1[%c0, %c0_0] : memref<1x2048xf32, #tpu.memory_space<vmem>>, vector<1x2048xf32>
    %cst = arith.constant -1.000000e+00 : f32
    %1 = vector.broadcast %cst : f32 to vector<1x2048xf32>
    %2 = arith.mulf %0, %1 : vector<1x2048xf32>
    %c0_1 = arith.constant 0 : index
    %c0_2 = arith.constant 0 : index
    %3 = vector.load %arg2[%c0_1, %c0_2] : memref<1x2048xf32, #tpu.memory_space<vmem>>, vector<1x2048xf32>
    tpu.vector_store %arg2[%c0_1, %c0_2], %2 {strides = array<i32>} : memref<1x2048xf32, #tpu.memory_space<vmem>>, vector<1x2048xf32>,
    return
  }
  func.func @transform_0(%arg0: i32) -> (i32, i32) {
    %c0_i32 = arith.constant 0 : i32
    %c0_i32_0 = arith.constant 0 : i32
    return %arg0, %c0_i32 : i32, i32
  }
  func.func @transform_1(%arg0: i32) -> (i32, i32) {
    %c0_i32 = arith.constant 0 : i32
    %c0_i32_0 = arith.constant 0 : i32
    return %arg0, %c0_i32 : i32, i32
  }
}

</mosaic_0001>

<bundles_post_ra>
// kernel: tpu_custom_call.1
= control target key start
LH: loop header
LB: loop body
LE: loop exit
PB: predicated region body
PF: predicated region fallthrough
CT: control target
= control target key end

     0   :  { %6 = vsyncpa [#allocation3], 0  ;;  %s118_s0 = inlined_call_operand.hbm [shape: f32[1,2048], index: 0, kind: input, shape index: {}]   ;;  %s119_s1 = inlined_call_operand.hbm [shape: f32[1,2048], index: 1, kind: output, shape index: {}]  }
   0x1   :  { %7 = vsyncpa [#allocation4], 0  ;;  %s13_s8 = sshll.u32 %s118_s0, 4  ;;  %s100_s9 = smov [#allocation2]   ;;  %s14_s8 = int_to_ptr.hbm [resolvable:$true] %s13_s8 }
   0x2   :  { %s15_s10 = sshll.u32 %s100_s9, 4  ;;  %s16_s10 = int_to_ptr.vmem [resolvable:$true] %s15_s10 }
   0x3   :  { %18 = dma.hbm_to_vmem [thread:$0]  %s14_s8, 256, %s16_s10, [#allocation3]  }
   0x4   :  { %96 = dma.done.wait [#allocation3], 256  }
   0x5   :  { %97 = vsyncadd [#allocation3], 4294967040  ;;  %s101_s11 = smov [#allocation5]   ;;  %s36_s15 = sshll.u32 %s119_s1, 4  ;;  %v23_v0 = vld [vmem:[#allocation2] sm:$0xff]  ;;  %v24_v1 = vld [vmem:[#allocation2 + $0x8] sm:$0xff]  ;;  %s37_s15 = int_to_ptr.hbm [resolvable:$true] %s36_s15 }
   0x6   :  { %s34_s12 = sshll.u32 %s101_s11, 4  ;;  %v25_v2 = vmul.f32 -1.0, %v23_v0  ;;  %v26_v3 = vmul.f32 -1.0, %v24_v1  ;;  %s35_s12 = int_to_ptr.vmem [resolvable:$true] %s34_s12 }
   0x8   :  { %27 = vst [vmem:[#allocation5] sm:$0xff] %v25_v2 }
   0x9   :  { %28 = vst [vmem:[#allocation5 + $0x8] sm:$0xff] %v26_v3 }
   0xa   :  { %39 = dma.vmem_to_hbm [thread:$0]  %s35_s12, 256, %s37_s15, [#allocation4]  }
   0xb   :  { %98 = dma.done.wait [#allocation4], 256  }
   0xc   :  { %99 = vsyncadd [#allocation4], 4294967040 }
   0xd   :  { %44 = vsyncpa [#allocation3], 1 }
   0xe   :  { %45 = vsyncpa [#allocation4], 1 }

</bundles_post_ra>
